<compile_context>
chip_gen: v5e
topology: v5e:2x2
jax: 0.10.0
libtpu: 0.0.40
codegen_flags: <defaults>
</compile_context>

<pallas_src>
import functools

import jax
import jax.numpy as jnp
from jax.experimental import pallas as pl
from jax.experimental.pallas import tpu as pltpu


def getHW(size):
    if isinstance(size, int):
        return (size, size)
    return tuple(size)


def _pick_batch_tile(B, per_elem_bytes, vmem_budget_bytes=4 << 20):
    """Largest divisor of B whose block fits the VMEM budget and leaves >= 2
    grid steps (so both v7x TensorCores get work when B >= 2)."""
    best = 1
    for bt in range(1, B + 1):
        if B % bt:
            continue
        if bt * per_elem_bytes > vmem_budget_bytes:
            continue
        if B >= 2 and B // bt < 2:
            continue
        best = bt
    return best


# ------------------------------ Pallas kernel ------------------------------ #
def _pooling_kernel(cls_ref, wfc_ref, bfc_ref, x_ref, wdw_ref, bdw_ref, o_ref,
                    *, k, s, Ho, Wo):
    """Bt batch elements per grid step.

    cls_ref : (Bt, 1, E)            cls tokens
    wfc_ref : (E, 2E), bfc_ref: (1, 2E)   Linear params, [m|c] channel order
    x_ref   : (Bt, Hp, Wp, E)       zero-padded NHWC image block
    wdw_ref : (2*k*k, E)            depthwise weights, row = m*k*k + tap
    bdw_ref : (1, 2E)               conv bias, [m|c] channel order
    o_ref   : (Bt, 1+Ho*Wo, 2E)     output rows, channel lane j = m*E + c
    """
    Bt = o_ref.shape[0]
    E = x_ref.shape[-1]
    C2 = o_ref.shape[-1]
    kk = k * k

    # ---- cls token: Linear(E -> 2E), one small MXU matmul per grid step ---- #
    cls_out = jnp.dot(cls_ref[:, 0, :].astype(jnp.float32), wfc_ref[...],
                      preferred_element_type=jnp.float32) + bfc_ref[...]

    # ---- depthwise conv (channel multiplier 2) as two E-lane halves -------- #
    wdw = wdw_ref[...].astype(jnp.float32)                     # hoisted once
    acc0 = jnp.zeros((Bt, Ho, Wo, E), jnp.float32)
    acc1 = jnp.zeros((Bt, Ho, Wo, E), jnp.float32)
    for di in range(k):                    # static, fully unrolled k*k taps
        row = pl.ds(di, Ho, stride=s) if s > 1 else pl.ds(di, Ho)
        for dj in range(k):
            col = pl.ds(dj, Wo, stride=s) if s > 1 else pl.ds(dj, Wo)
            tap = x_ref[:, row, col, :].astype(jnp.float32)    # (Bt,Ho,Wo,E)
            t = di * k + dj
            acc0 = acc0 + tap * wdw[t:t + 1, :]
            acc1 = acc1 + tap * wdw[kk + t:kk + t + 1, :]
    conv = jnp.concatenate([acc0, acc1], axis=-1) + bdw_ref[...]   # (Bt,Ho,Wo,2E)

    # ---- assemble full output slab in-register, single dense store --------- #
    slab = jnp.concatenate([cls_out.reshape(Bt, 1, C2),
                            conv.reshape(Bt, Ho * Wo, C2)], axis=1)
    o_ref[...] = slab.astype(o_ref.dtype)


# ------------------------------ module wrapper ------------------------------ #
class PoolingLayerPallas:
    def __init__(self, image_size, embed_dim, kernel_size, stride, *,
                 key=None, act_dtype=None):
        self.image_size = getHW(image_size)
        self.embed_dim = int(embed_dim)
        self.kernel_size = int(kernel_size)
        self.stride = int(stride)
        self.padding = (self.kernel_size - 1) // 2
        self.act_dtype = act_dtype          # e.g. jnp.bfloat16 on v6e/v7x
        H, W = self.image_size
        k, s, p = self.kernel_size, self.stride, self.padding
        self.out_image_size = ((H + 2 * p - k) // s + 1,
                               (W + 2 * p - k) // s + 1)

        if key is None:
            key = jax.random.PRNGKey(0)
        k1, k2, k3, k4 = jax.random.split(key, 4)
        E, C2 = self.embed_dim, 2 * self.embed_dim
        # nn.Linear(E, 2E) default init
        b_fc = 1.0 / (E ** 0.5)
        self.fc_w = jax.random.uniform(k1, (C2, E), minval=-b_fc, maxval=b_fc,
                                       dtype=jnp.float32)
        self.fc_b = jax.random.uniform(k2, (C2,), minval=-b_fc, maxval=b_fc,
                                       dtype=jnp.float32)
        # nn.Conv2d(E, 2E, k, groups=E): weight (2E, 1, k, k), fan_in = k*k
        b_cv = 1.0 / ((k * k) ** 0.5)
        self.conv_w = jax.random.uniform(k3, (C2, 1, k, k), minval=-b_cv,
                                         maxval=b_cv, dtype=jnp.float32)
        self.conv_b = jax.random.uniform(k4, (C2,), minval=-b_cv, maxval=b_cv,
                                         dtype=jnp.float32)

        # ---- kernel-side parameter layouts ([m-major | c] channel order) ----
        # kernel lane j = m*E + c  <->  torch grouped-conv out channel 2c+m
        mc = (jnp.arange(C2) % E) * 2 + (jnp.arange(C2) // E)
        self.wfc_k = self.fc_w[mc, :].T                          # (E, 2E)
        self.bfc_k = self.fc_b[mc].reshape(1, C2)
        cw = self.conv_w.reshape(C2, k * k)[mc, :]               # rows in [m|c]
        self.wdw_k = cw.reshape(2, E, k * k).transpose(0, 2, 1).reshape(
            2 * k * k, E)                                        # row = m*k*k+t
        self.bdw_k = self.conv_b[mc].reshape(1, C2)

    def __call__(self, x):
        B, S, E = x.shape
        H, W = self.image_size
        k, s, p = self.kernel_size, self.stride, self.padding
        Ho, Wo = self.out_image_size
        C2 = 2 * E
        assert S == 1 + H * W and E == self.embed_dim

        # ---- glue: split cls / image, zero-pad only (no dup, no transpose) - #
        cls = x[:, 0:1, :]                                       # (B, 1, E)
        img = x[:, 1:, :].reshape(B, H, W, E)                    # NHWC
        Hp = (Ho - 1) * s + k                                    # rows conv reads
        Wp = (Wo - 1) * s + k
        pad_b = max(Hp - p - H, 0)                               # crop if negative
        pad_r = max(Wp - p - W, 0)
        xp = jnp.pad(img, ((0, 0), (p, pad_b), (p, pad_r), (0, 0)))
        xp = xp[:, :Hp, :Wp, :]
        if self.act_dtype is not None:                           # bf16 DMA path
            xp = xp.astype(self.act_dtype)
            cls = cls.astype(self.act_dtype)

        # ---- batch blocking: Bt per step, keep >= 2 steps for megacore ----- #
        per_elem = (Hp * Wp * E + (1 + Ho * Wo) * C2) * xp.dtype.itemsize
        Bt = _pick_batch_tile(B, per_elem)
        grid = (B // Bt,)
        seq_out = 1 + Ho * Wo

        kernel = functools.partial(_pooling_kernel, k=k, s=s, Ho=Ho, Wo=Wo)
        flops = 2 * B * (Ho * Wo * C2 * k * k + E * C2)
        bytes_accessed = (xp.size * xp.dtype.itemsize
                          + cls.size * cls.dtype.itemsize
                          + 4 * (self.wfc_k.size + self.wdw_k.size + 2 * C2)
                          + B * seq_out * C2 * x.dtype.itemsize)

        out_k = pl.pallas_call(
            kernel,
            out_shape=jax.ShapeDtypeStruct((B, seq_out, C2), x.dtype),
            grid_spec=pltpu.PrefetchScalarGridSpec(
                num_scalar_prefetch=0,
                grid=grid,
                in_specs=[
                    pl.BlockSpec((Bt, 1, E), lambda b: (b, 0, 0)),
                    pl.BlockSpec((E, C2), lambda b: (0, 0)),
                    pl.BlockSpec((1, C2), lambda b: (0, 0)),
                    pl.BlockSpec((Bt, Hp, Wp, E), lambda b: (b, 0, 0, 0)),
                    pl.BlockSpec((2 * k * k, E), lambda b: (0, 0)),
                    pl.BlockSpec((1, C2), lambda b: (0, 0)),
                ],
                out_specs=pl.BlockSpec((Bt, seq_out, C2), lambda b: (b, 0, 0)),
            ),
            compiler_params=pltpu.CompilerParams(
                dimension_semantics=("parallel",)),
            cost_estimate=pl.CostEstimate(
                flops=flops, transcendentals=0, bytes_accessed=bytes_accessed),
        )(cls, self.wfc_k, self.bfc_k, xp, self.wdw_k, self.bdw_k)

        # ---- recover torch's 2c+m channel interleave on the (small) output - #
        out = out_k.reshape(B, seq_out, 2, E).transpose(0, 1, 3, 2)
        return out.reshape(B, seq_out, C2)


# ----------------------------------- main ----------------------------------- #
if __name__ == "__main__":
    def reference(mod, x):
        B, _, E = x.shape
        H, W = mod.image_size
        Ho, Wo = mod.out_image_size
        p, s = mod.padding, mod.stride
        cls_ref = x[:, 0:1, :] @ mod.fc_w.T + mod.fc_b
        img_nchw = x[:, 1:, :].reshape(B, H, W, E).transpose(0, 3, 1, 2)
        conv = jax.lax.conv_general_dilated(
            img_nchw, mod.conv_w, window_strides=(s, s),
            padding=[(p, p), (p, p)],
            dimension_numbers=("NCHW", "OIHW", "NCHW"),
            feature_group_count=E)
        conv = conv + mod.conv_b[None, :, None, None]
        conv = conv.transpose(0, 2, 3, 1).reshape(B, Ho * Wo, 2 * E)
        return jnp.concatenate([cls_ref, conv], axis=1)

    key = jax.random.PRNGKey(0)

    # Config 1: B=2, 8x8 token grid, E=128 (lane-dense halves), k=3, s=2.
    # x: (2, 65, 128) -> out: (2, 17, 256).  grid=(2,), Bt=1.
    x_key, p_key, key = jax.random.split(key, 3)
    B, H, W, E, ksz, stride = 2, 8, 8, 128, 3, 2
    x = jax.random.normal(x_key, (B, 1 + H * W, E), dtype=jnp.float32)
    mod = PoolingLayerPallas((H, W), E, ksz, stride, key=p_key)
    out = jax.block_until_ready(jax.jit(mod.__call__)(x))
    ref = reference(mod, x)
    Ho, Wo = mod.out_image_size
    assert out.shape == (B, 1 + Ho * Wo, 2 * E), out.shape
    assert jnp.allclose(out, ref, atol=1e-4, rtol=1e-4), \
        float(jnp.max(jnp.abs(out - ref)))

    # Config 2: odd / non-square image, even kernel, p=0 (bottom/right crop),
    # B=4 -> Bt=2 batch blocking.  x: (4, 36, 128) -> out: (4, 7, 256).
    x_key, p_key, key = jax.random.split(key, 3)
    B, H, W, E, ksz, stride = 4, 7, 5, 128, 2, 2
    x = jax.random.normal(x_key, (B, 1 + H * W, E), dtype=jnp.float32)
    mod = PoolingLayerPallas((H, W), E, ksz, stride, key=p_key)
    out = jax.block_until_ready(jax.jit(mod.__call__)(x))
    ref = reference(mod, x)
    Ho, Wo = mod.out_image_size
    assert out.shape == (B, 1 + Ho * Wo, 2 * E), out.shape
    assert jnp.allclose(out, ref, atol=1e-4, rtol=1e-4), \
        float(jnp.max(jnp.abs(out - ref)))

    print("KERNEL_OK")
</pallas_src>

<mosaic_0001>
module attributes {stable_mosaic.version = 11 : i64} {
  func.func @_pooling_kernel(%arg0: i32, %arg1: memref<1x1x128xf32, #tpu.memory_space<vmem>>, %arg2: memref<128x256xf32, #tpu.memory_space<vmem>>, %arg3: memref<1x256xf32, #tpu.memory_space<vmem>>, %arg4: memref<1x9x9x128xf32, #tpu.memory_space<vmem>>, %arg5: memref<18x128xf32, #tpu.memory_space<vmem>>, %arg6: memref<1x256xf32, #tpu.memory_space<vmem>>, %arg7: memref<1x17x256xf32, #tpu.memory_space<vmem>>) attributes {dimension_semantics = [#tpu.dimension_semantics<parallel>], iteration_bounds = array<i64: 2>, scalar_prefetch = 0 : i64, scratch_operands = 0 : i64, tpu.core_type = #tpu.core_type<tc>, window_params = [{transform_indices = @transform_0, window_bounds = array<i64: 1, 1, 128>}, {pipeline_mode = #tpu.pipeline_mode<synchronous>, transform_indices = @transform_1, window_bounds = array<i64: 128, 256>}, {pipeline_mode = #tpu.pipeline_mode<synchronous>, transform_indices = @transform_2, window_bounds = array<i64: 1, 256>}, {transform_indices = @transform_3, window_bounds = array<i64: 1, 9, 9, 128>}, {pipeline_mode = #tpu.pipeline_mode<synchronous>, transform_indices = @transform_4, window_bounds = array<i64: 18, 128>}, {pipeline_mode = #tpu.pipeline_mode<synchronous>, transform_indices = @transform_5, window_bounds = array<i64: 1, 256>}, {transform_indices = @transform_6, window_bounds = array<i64: 1, 17, 256>}]} {
    %c0 = arith.constant 0 : index
    %c0_0 = arith.constant 0 : index
    %c0_1 = arith.constant 0 : index
    %0 = vector.load %arg1[%c0, %c0_0, %c0_1] : memref<1x1x128xf32, #tpu.memory_space<vmem>>, vector<1x1x128xf32>
    %1 = vector.shape_cast %0 : vector<1x1x128xf32> to vector<1x128xf32>
    %c0_2 = arith.constant 0 : index
    %c0_3 = arith.constant 0 : index
    %2 = vector.load %arg2[%c0_2, %c0_3] : memref<128x256xf32, #tpu.memory_space<vmem>>, vector<128x256xf32>
    %cst = arith.constant dense<0.000000e+00> : vector<1x256xf32>
    %3 = tpu.matmul %1, %2, %cst {dimension_numbers = #tpu.dot_dimension_numbers<[1], [0], [0], [1], [0, 0, 1, 1], [], []>} : vector<1x128xf32>, vector<128x256xf32>, vector<1x256xf32> -> vector<1x256xf32>
    %c0_4 = arith.constant 0 : index
    %c0_5 = arith.constant 0 : index
    %4 = vector.load %arg3[%c0_4, %c0_5] : memref<1x256xf32, #tpu.memory_space<vmem>>, vector<1x256xf32>
    %5 = arith.addf %3, %4 : vector<1x256xf32>
    %c0_6 = arith.constant 0 : index
    %c0_7 = arith.constant 0 : index
    %6 = vector.load %arg5[%c0_6, %c0_7] : memref<18x128xf32, #tpu.memory_space<vmem>>, vector<18x128xf32>
    %cst_8 = arith.constant 0.000000e+00 : f32
    %7 = vector.broadcast %cst_8 : f32 to vector<1x4x4x128xf32>
    %cst_9 = arith.constant 0.000000e+00 : f32
    %8 = vector.broadcast %cst_9 : f32 to vector<1x4x4x128xf32>
    %c0_10 = arith.constant 0 : index
    %c0_11 = arith.constant 0 : index
    %c0_12 = arith.constant 0 : index
    %c0_13 = arith.constant 0 : index
    %9 = tpu.strided_load %arg4[%c0_10, %c0_11, %c0_12, %c0_13] {strides = array<i32: 1, 2, 2, 1>} : memref<1x9x9x128xf32, #tpu.memory_space<vmem>>, vector<1x4x4x128xf32>
    %10 = vector.extract_strided_slice %6 {offsets = [0, 0], sizes = [1, 128], strides = [1, 1]} : vector<18x128xf32> to vector<1x128xf32>
    %11 = vector.shape_cast %10 : vector<1x128xf32> to vector<1x1x1x128xf32>
    %12 = vector.broadcast %11 : vector<1x1x1x128xf32> to vector<1x4x4x128xf32>
    %13 = arith.mulf %9, %12 : vector<1x4x4x128xf32>
    %14 = arith.addf %7, %13 : vector<1x4x4x128xf32>
    %15 = vector.extract_strided_slice %6 {offsets = [9, 0], sizes = [1, 128], strides = [1, 1]} : vector<18x128xf32> to vector<1x128xf32>
    %16 = vector.shape_cast %15 : vector<1x128xf32> to vector<1x1x1x128xf32>
    %17 = vector.broadcast %16 : vector<1x1x1x128xf32> to vector<1x4x4x128xf32>
    %18 = arith.mulf %9, %17 : vector<1x4x4x128xf32>
    %19 = arith.addf %8, %18 : vector<1x4x4x128xf32>
    %c0_14 = arith.constant 0 : index
    %c0_15 = arith.constant 0 : index
    %c1 = arith.constant 1 : index
    %c0_16 = arith.constant 0 : index
    %20 = tpu.strided_load %arg4[%c0_14, %c0_15, %c1, %c0_16] {strides = array<i32: 1, 2, 2, 1>} : memref<1x9x9x128xf32, #tpu.memory_space<vmem>>, vector<1x4x4x128xf32>
    %21 = vector.extract_strided_slice %6 {offsets = [1, 0], sizes = [1, 128], strides = [1, 1]} : vector<18x128xf32> to vector<1x128xf32>
    %22 = vector.shape_cast %21 : vector<1x128xf32> to vector<1x1x1x128xf32>
    %23 = vector.broadcast %22 : vector<1x1x1x128xf32> to vector<1x4x4x128xf32>
    %24 = arith.mulf %20, %23 : vector<1x4x4x128xf32>
    %25 = arith.addf %14, %24 : vector<1x4x4x128xf32>
    %26 = vector.extract_strided_slice %6 {offsets = [10, 0], sizes = [1, 128], strides = [1, 1]} : vector<18x128xf32> to vector<1x128xf32>
    %27 = vector.shape_cast %26 : vector<1x128xf32> to vector<1x1x1x128xf32>
    %28 = vector.broadcast %27 : vector<1x1x1x128xf32> to vector<1x4x4x128xf32>
    %29 = arith.mulf %20, %28 : vector<1x4x4x128xf32>
    %30 = arith.addf %19, %29 : vector<1x4x4x128xf32>
    %c0_17 = arith.constant 0 : index
    %c0_18 = arith.constant 0 : index
    %c2 = arith.constant 2 : index
    %c0_19 = arith.constant 0 : index
    %31 = tpu.strided_load %arg4[%c0_17, %c0_18, %c2, %c0_19] {strides = array<i32: 1, 2, 2, 1>} : memref<1x9x9x128xf32, #tpu.memory_space<vmem>>, vector<1x4x4x128xf32>
    %32 = vector.extract_strided_slice %6 {offsets = [2, 0], sizes = [1, 128], strides = [1, 1]} : vector<18x128xf32> to vector<1x128xf32>
    %33 = vector.shape_cast %32 : vector<1x128xf32> to vector<1x1x1x128xf32>
    %34 = vector.broadcast %33 : vector<1x1x1x128xf32> to vector<1x4x4x128xf32>
    %35 = arith.mulf %31, %34 : vector<1x4x4x128xf32>
    %36 = arith.addf %25, %35 : vector<1x4x4x128xf32>
    %37 = vector.extract_strided_slice %6 {offsets = [11, 0], sizes = [1, 128], strides = [1, 1]} : vector<18x128xf32> to vector<1x128xf32>
    %38 = vector.shape_cast %37 : vector<1x128xf32> to vector<1x1x1x128xf32>
    %39 = vector.broadcast %38 : vector<1x1x1x128xf32> to vector<1x4x4x128xf32>
    %40 = arith.mulf %31, %39 : vector<1x4x4x128xf32>
    %41 = arith.addf %30, %40 : vector<1x4x4x128xf32>
    %c0_20 = arith.constant 0 : index
    %c1_21 = arith.constant 1 : index
    %c0_22 = arith.constant 0 : index
    %c0_23 = arith.constant 0 : index
    %42 = tpu.strided_load %arg4[%c0_20, %c1_21, %c0_22, %c0_23] {strides = array<i32: 1, 2, 2, 1>} : memref<1x9x9x128xf32, #tpu.memory_space<vmem>>, vector<1x4x4x128xf32>
    %43 = vector.extract_strided_slice %6 {offsets = [3, 0], sizes = [1, 128], strides = [1, 1]} : vector<18x128xf32> to vector<1x128xf32>
    %44 = vector.shape_cast %43 : vector<1x128xf32> to vector<1x1x1x128xf32>
    %45 = vector.broadcast %44 : vector<1x1x1x128xf32> to vector<1x4x4x128xf32>
    %46 = arith.mulf %42, %45 : vector<1x4x4x128xf32>
    %47 = arith.addf %36, %46 : vector<1x4x4x128xf32>
    %48 = vector.extract_strided_slice %6 {offsets = [12, 0], sizes = [1, 128], strides = [1, 1]} : vector<18x128xf32> to vector<1x128xf32>
    %49 = vector.shape_cast %48 : vector<1x128xf32> to vector<1x1x1x128xf32>
    %50 = vector.broadcast %49 : vector<1x1x1x128xf32> to vector<1x4x4x128xf32>
    %51 = arith.mulf %42, %50 : vector<1x4x4x128xf32>
    %52 = arith.addf %41, %51 : vector<1x4x4x128xf32>
    %c0_24 = arith.constant 0 : index
    %c1_25 = arith.constant 1 : index
    %c1_26 = arith.constant 1 : index
    %c0_27 = arith.constant 0 : index
    %53 = tpu.strided_load %arg4[%c0_24, %c1_25, %c1_26, %c0_27] {strides = array<i32: 1, 2, 2, 1>} : memref<1x9x9x128xf32, #tpu.memory_space<vmem>>, vector<1x4x4x128xf32>
    %54 = vector.extract_strided_slice %6 {offsets = [4, 0], sizes = [1, 128], strides = [1, 1]} : vector<18x128xf32> to vector<1x128xf32>
    %55 = vector.shape_cast %54 : vector<1x128xf32> to vector<1x1x1x128xf32>
    %56 = vector.broadcast %55 : vector<1x1x1x128xf32> to vector<1x4x4x128xf32>
    %57 = arith.mulf %53, %56 : vector<1x4x4x128xf32>
    %58 = arith.addf %47, %57 : vector<1x4x4x128xf32>
    %59 = vector.extract_strided_slice %6 {offsets = [13, 0], sizes = [1, 128], strides = [1, 1]} : vector<18x128xf32> to vector<1x128xf32>
    %60 = vector.shape_cast %59 : vector<1x128xf32> to vector<1x1x1x128xf32>
    %61 = vector.broadcast %60 : vector<1x1x1x128xf32> to vector<1x4x4x128xf32>
    %62 = arith.mulf %53, %61 : vector<1x4x4x128xf32>
    %63 = arith.addf %52, %62 : vector<1x4x4x128xf32>
    %c0_28 = arith.constant 0 : index
    %c1_29 = arith.constant 1 : index
    %c2_30 = arith.constant 2 : index
    %c0_31 = arith.constant 0 : index
    %64 = tpu.strided_load %arg4[%c0_28, %c1_29, %c2_30, %c0_31] {strides = array<i32: 1, 2, 2, 1>} : memref<1x9x9x128xf32, #tpu.memory_space<vmem>>, vector<1x4x4x128xf32>
    %65 = vector.extract_strided_slice %6 {offsets = [5, 0], sizes = [1, 128], strides = [1, 1]} : vector<18x128xf32> to vector<1x128xf32>
    %66 = vector.shape_cast %65 : vector<1x128xf32> to vector<1x1x1x128xf32>
    %67 = vector.broadcast %66 : vector<1x1x1x128xf32> to vector<1x4x4x128xf32>
    %68 = arith.mulf %64, %67 : vector<1x4x4x128xf32>
    %69 = arith.addf %58, %68 : vector<1x4x4x128xf32>
    %70 = vector.extract_strided_slice %6 {offsets = [14, 0], sizes = [1, 128], strides = [1, 1]} : vector<18x128xf32> to vector<1x128xf32>
    %71 = vector.shape_cast %70 : vector<1x128xf32> to vector<1x1x1x128xf32>
    %72 = vector.broadcast %71 : vector<1x1x1x128xf32> to vector<1x4x4x128xf32>
    %73 = arith.mulf %64, %72 : vector<1x4x4x128xf32>
    %74 = arith.addf %63, %73 : vector<1x4x4x128xf32>
    %c0_32 = arith.constant 0 : index
    %c2_33 = arith.constant 2 : index
    %c0_34 = arith.constant 0 : index
    %c0_35 = arith.constant 0 : index
    %75 = tpu.strided_load %arg4[%c0_32, %c2_33, %c0_34, %c0_35] {strides = array<i32: 1, 2, 2, 1>} : memref<1x9x9x128xf32, #tpu.memory_space<vmem>>, vector<1x4x4x128xf32>
    %76 = vector.extract_strided_slice %6 {offsets = [6, 0], sizes = [1, 128], strides = [1, 1]} : vector<18x128xf32> to vector<1x128xf32>
    %77 = vector.shape_cast %76 : vector<1x128xf32> to vector<1x1x1x128xf32>
    %78 = vector.broadcast %77 : vector<1x1x1x128xf32> to vector<1x4x4x128xf32>
    %79 = arith.mulf %75, %78 : vector<1x4x4x128xf32>
    %80 = arith.addf %69, %79 : vector<1x4x4x128xf32>
    %81 = vector.extract_strided_slice %6 {offsets = [15, 0], sizes = [1, 128], strides = [1, 1]} : vector<18x128xf32> to vector<1x128xf32>
    %82 = vector.shape_cast %81 : vector<1x128xf32> to vector<1x1x1x128xf32>
    %83 = vector.broadcast %82 : vector<1x1x1x128xf32> to vector<1x4x4x128xf32>
    %84 = arith.mulf %75, %83 : vector<1x4x4x128xf32>
    %85 = arith.addf %74, %84 : vector<1x4x4x128xf32>
    %c0_36 = arith.constant 0 : index
    %c2_37 = arith.constant 2 : index
    %c1_38 = arith.constant 1 : index
    %c0_39 = arith.constant 0 : index
    %86 = tpu.strided_load %arg4[%c0_36, %c2_37, %c1_38, %c0_39] {strides = array<i32: 1, 2, 2, 1>} : memref<1x9x9x128xf32, #tpu.memory_space<vmem>>, vector<1x4x4x128xf32>
    %87 = vector.extract_strided_slice %6 {offsets = [7, 0], sizes = [1, 128], strides = [1, 1]} : vector<18x128xf32> to vector<1x128xf32>
    %88 = vector.shape_cast %87 : vector<1x128xf32> to vector<1x1x1x128xf32>
    %89 = vector.broadcast %88 : vector<1x1x1x128xf32> to vector<1x4x4x128xf32>
    %90 = arith.mulf %86, %89 : vector<1x4x4x128xf32>
    %91 = arith.addf %80, %90 : vector<1x4x4x128xf32>
    %92 = vector.extract_strided_slice %6 {offsets = [16, 0], sizes = [1, 128], strides = [1, 1]} : vector<18x128xf32> to vector<1x128xf32>
    %93 = vector.shape_cast %92 : vector<1x128xf32> to vector<1x1x1x128xf32>
    %94 = vector.broadcast %93 : vector<1x1x1x128xf32> to vector<1x4x4x128xf32>
    %95 = arith.mulf %86, %94 : vector<1x4x4x128xf32>
    %96 = arith.addf %85, %95 : vector<1x4x4x128xf32>
    %c0_40 = arith.constant 0 : index
    %c2_41 = arith.constant 2 : index
    %c2_42 = arith.constant 2 : index
    %c0_43 = arith.constant 0 : index
    %97 = tpu.strided_load %arg4[%c0_40, %c2_41, %c2_42, %c0_43] {strides = array<i32: 1, 2, 2, 1>} : memref<1x9x9x128xf32, #tpu.memory_space<vmem>>, vector<1x4x4x128xf32>
    %98 = vector.extract_strided_slice %6 {offsets = [8, 0], sizes = [1, 128], strides = [1, 1]} : vector<18x128xf32> to vector<1x128xf32>
    %99 = vector.shape_cast %98 : vector<1x128xf32> to vector<1x1x1x128xf32>
    %100 = vector.broadcast %99 : vector<1x1x1x128xf32> to vector<1x4x4x128xf32>
    %101 = arith.mulf %97, %100 : vector<1x4x4x128xf32>
    %102 = arith.addf %91, %101 : vector<1x4x4x128xf32>
    %103 = vector.extract_strided_slice %6 {offsets = [17, 0], sizes = [1, 128], strides = [1, 1]} : vector<18x128xf32> to vector<1x128xf32>
    %104 = vector.shape_cast %103 : vector<1x128xf32> to vector<1x1x1x128xf32>
    %105 = vector.broadcast %104 : vector<1x1x1x128xf32> to vector<1x4x4x128xf32>
    %106 = arith.mulf %97, %105 : vector<1x4x4x128xf32>
    %107 = arith.addf %96, %106 : vector<1x4x4x128xf32>
    %108 = tpu.concatenate %102, %107 in 3 : vector<1x4x4x128xf32>, vector<1x4x4x128xf32> -> vector<1x4x4x256xf32>
    %c0_44 = arith.constant 0 : index
    %c0_45 = arith.constant 0 : index
    %109 = vector.load %arg6[%c0_44, %c0_45] : memref<1x256xf32, #tpu.memory_space<vmem>>, vector<1x256xf32>
    %110 = vector.shape_cast %109 : vector<1x256xf32> to vector<1x1x1x256xf32>
    %111 = vector.broadcast %110 : vector<1x1x1x256xf32> to vector<1x4x4x256xf32>
    %112 = arith.addf %108, %111 : vector<1x4x4x256xf32>
    %113 = vector.shape_cast %5 : vector<1x256xf32> to vector<1x1x256xf32>
    %114 = vector.shape_cast %112 : vector<1x4x4x256xf32> to vector<1x16x256xf32>
    %115 = tpu.concatenate %113, %114 in 1 : vector<1x1x256xf32>, vector<1x16x256xf32> -> vector<1x17x256xf32>
    %c0_46 = arith.constant 0 : index
    %c0_47 = arith.constant 0 : index
    %c0_48 = arith.constant 0 : index
    %116 = vector.load %arg7[%c0_46, %c0_47, %c0_48] : memref<1x17x256xf32, #tpu.memory_space<vmem>>, vector<1x17x256xf32>
    tpu.vector_store %arg7[%c0_46, %c0_47, %c0_48], %115 {strides = array<i32>} : memref<1x17x256xf32, #tpu.memory_space<vmem>>, vector<1x17x256xf32>,
    return
  }
  func.func @transform_0(%arg0: i32) -> (i32, i32, i32) {
    %c0_i32 = arith.constant 0 : i32
    %c0_i32_0 = arith.constant 0 : i32
    %c0_i32_1 = arith.constant 0 : i32
    return %arg0, %c0_i32, %c0_i32_0 : i32, i32, i32
  }
  func.func @transform_1(%arg0: i32) -> (i32, i32) {
    %c0_i32 = arith.constant 0 : i32
    %c0_i32_0 = arith.constant 0 : i32
    %c0_i32_1 = arith.constant 0 : i32
    return %c0_i32, %c0_i32_0 : i32, i32
  }
  func.func @transform_2(%arg0: i32) -> (i32, i32) {
    %c0_i32 = arith.constant 0 : i32
    %c0_i32_0 = arith.constant 0 : i32
    %c0_i32_1 = arith.constant 0 : i32
    return %c0_i32, %c0_i32_0 : i32, i32
  }
  func.func @transform_3(%arg0: i32) -> (i32, i32, i32, i32) {
    %c0_i32 = arith.constant 0 : i32
    %c0_i32_0 = arith.constant 0 : i32
    %c0_i32_1 = arith.constant 0 : i32
    %c0_i32_2 = arith.constant 0 : i32
    return %arg0, %c0_i32, %c0_i32_0, %c0_i32_1 : i32, i32, i32, i32
  }
  func.func @transform_4(%arg0: i32) -> (i32, i32) {
    %c0_i32 = arith.constant 0 : i32
    %c0_i32_0 = arith.constant 0 : i32
    %c0_i32_1 = arith.constant 0 : i32
    return %c0_i32, %c0_i32_0 : i32, i32
  }
  func.func @transform_5(%arg0: i32) -> (i32, i32) {
    %c0_i32 = arith.constant 0 : i32
    %c0_i32_0 = arith.constant 0 : i32
    %c0_i32_1 = arith.constant 0 : i32
    return %c0_i32, %c0_i32_0 : i32, i32
  }
  func.func @transform_6(%arg0: i32) -> (i32, i32, i32) {
    %c0_i32 = arith.constant 0 : i32
    %c0_i32_0 = arith.constant 0 : i32
    %c0_i32_1 = arith.constant 0 : i32
    return %arg0, %c0_i32, %c0_i32_0 : i32, i32, i32
  }
}

</mosaic_0001>

<bundles_post_ra>
// kernel: a_call__.1
= control target key start
LH: loop header
LB: loop body
LE: loop exit
PB: predicated region body
PF: predicated region fallthrough
CT: control target
= control target key end

     0   :  { %s827_s21 = smov 0   ;;  %s1029_s0 = inlined_call_operand.vmem [shape: f32[2,1,128], index: 0, kind: input, shape index: {}]   ;;  %s1030_s1 = inlined_call_operand.vmem [shape: f32[128,256], index: 1, kind: input, shape index: {}]   ;;  %s1031_s2 = inlined_call_operand.vmem [shape: f32[1,256], index: 2, kind: input, shape index: {}]   ;;  %s1032_s3 = inlined_call_operand.vmem [shape: f32[2,9,9,128], index: 3, kind: input, shape index: {}]   ;;  %s1033_s4 = inlined_call_operand.vmem [shape: f32[18,128], index: 4, kind: input, shape index: {}]   ;;  %s1034_s5 = inlined_call_operand.vmem [shape: f32[1,256], index: 5, kind: input, shape index: {}]   ;;  %s1035_s6 = inlined_call_operand.vmem [shape: f32[2,17,256], index: 6, kind: output, shape index: {}]  }
   0x1 LB: > { %s730_s22 = sadd.s32 4294967295, %s790_s21   ;;  %p734_p0 = scmp.ge.s32.totalorder %s790_s21, 1  ;;  %s790_s21 = sphi %s827_s21, %s16_s21  }
   0x2   : > { %p220_p1 = scmp.lt.s32.totalorder %s790_s21, 3 }
   0x4   : > { %p221_p2 = pnand %p734_p0, %p220_p1 }
   0x5   : > { %p253_p3 = scmp.lt.s32.totalorder (!%p221_p2), %s730_s22, 1 }
   0x6   : > { %224 = sbr.rel (%p221_p2) target bundleno = 174 (0xae), region = 44 }
   0xb   : > { %v297_v0 = vld [vmem:[%s1030_s1 + $0xf0] sm:$0xff]  ;;  %v298_v1 = vld [vmem:[%s1030_s1 + $0xf8] sm:$0xff]  ;;  %v295_v2 = vld [vmem:[%s1030_s1 + $0xe0] sm:$0xff]  ;;  %s1037_s22 = smov (!%p253_p3, %s730_s22), 1  ;;  %vm607_vm0 = vcmask 1043456   ;;  %vm623_vm1 = vcmask 1040384  }
   0xc   : > { %305 = vmatpush.msra.mxu0 %v297_v0  ;;  %325 = vmatpush.msra.mxu1 %v298_v1  ;;  %v296_v3 = vld [vmem:[%s1030_s1 + $0xe8] sm:$0xff]  ;;  %v293_v4 = vld [vmem:[%s1030_s1 + $0xd0] sm:$0xff]  ;;  %v294_v5 = vld [vmem:[%s1030_s1 + $0xd8] sm:$0xff]  ;;  %s255_s17 = scalar_lea.vmem %s1029_s0, %s1037_s22  ;;  %s774_s24 = smul.u32 144, %s1037_s22 }
   0xd   : > { %v291_v6 = vld [vmem:[%s1030_s1 + $0xc0] sm:$0xff]  ;;  %v292_v7 = vld [vmem:[%s1030_s1 + $0xc8] sm:$0xff]  ;;  %v289_v8 = vld [vmem:[%s1030_s1 + $0xb0] sm:$0xff]  ;;  %s775_s12 = smul.u32 48, %s1037_s22 }
   0xe   : > { %306 = vmatpush.msra.mxu0 %v295_v2  ;;  %326 = vmatpush.msra.mxu1 %v296_v3  ;;  %v290_v9 = vld [vmem:[%s1030_s1 + $0xb8] sm:$0xff]  ;;  %v287_v10 = vld [vmem:[%s1030_s1 + $0xa0] sm:$0xff]  ;;  %v288_v11 = vld [vmem:[%s1030_s1 + $0xa8] sm:$0xff]  ;;  %s945_s27 = scalar_lea.vmem %s1032_s3, %s774_s24 }
   0xf   : > { %v285_v12 = vld [vmem:[%s1030_s1 + $0x90] sm:$0xff]  ;;  %v286_v13 = vld [vmem:[%s1030_s1 + $0x98] sm:$0xff]  ;;  %v283_v14 = vld [vmem:[%s1030_s1 + $0x80] sm:$0xff] }
  0x10   : > { %307 = vmatpush.msra.mxu0 %v293_v4  ;;  %327 = vmatpush.msra.mxu1 %v294_v5  ;;  %v284_v15 = vld [vmem:[%s1030_s1 + $0x88] sm:$0xff]  ;;  %v281_v16 = vld [vmem:[%s1030_s1 + $0x70] sm:$0xff]  ;;  %v282_v17 = vld [vmem:[%s1030_s1 + $0x78] sm:$0xff] }
  0x11   : > { %v279_v18 = vld [vmem:[%s1030_s1 + $0x60] sm:$0xff]  ;;  %v280_v19 = vld [vmem:[%s1030_s1 + $0x68] sm:$0xff]  ;;  %v277_v20 = vld [vmem:[%s1030_s1 + $0x50] sm:$0xff] }
  0x12   : > { %308 = vmatpush.msra.mxu0 %v291_v6  ;;  %328 = vmatpush.msra.mxu1 %v292_v7  ;;  %v278_v21 = vld [vmem:[%s1030_s1 + $0x58] sm:$0xff]  ;;  %v275_v22 = vld [vmem:[%s1030_s1 + $0x40] sm:$0xff]  ;;  %v276_v23 = vld [vmem:[%s1030_s1 + $0x48] sm:$0xff] }
  0x13   : > { %v273_v24 = vld [vmem:[%s1030_s1 + $0x30] sm:$0xff]  ;;  %v274_v25 = vld [vmem:[%s1030_s1 + $0x38] sm:$0xff]  ;;  %v271_v26 = vld [vmem:[%s1030_s1 + $0x20] sm:$0xff] }
  0x14   : > { %309 = vmatpush.msra.mxu0 %v289_v8  ;;  %329 = vmatpush.msra.mxu1 %v290_v9  ;;  %v272_v27 = vld [vmem:[%s1030_s1 + $0x28] sm:$0xff]  ;;  %v269_v28 = vld [vmem:[%s1030_s1 + $0x10] sm:$0xff]  ;;  %v270_v29 = vld [vmem:[%s1030_s1 + $0x18] sm:$0xff] }
  0x15   : > { %v267_v30 = vld [vmem:[%s1030_s1] sm:$0xff]  ;;  %v268_v31 = vld [vmem:[%s1030_s1 + $0x8] sm:$0xff] }
  0x16   : > { %310 = vmatpush.msra.mxu0 %v287_v10  ;;  %330 = vmatpush.msra.mxu1 %v288_v11  ;;  %v266_v32 = vld [vmem:[%s255_s17] sm:$0x1]  ;;  %v950_v33 = vld [vmem:[%s1033_s4 + $0x8] sm:$0xff]  ;;  %v740_v47 = vld [vmem:[%s945_s27 + $0x1] ss:$2 sm:$0xf]  ;;  %s265_s17 = scalar_lea.vmem %s1035_s6, %s775_s12 }
  0x17   : > { %v364_v34 = vperm.slane %v950_v33, 1  ;;  %v956_v35 = vld [vmem:[%s1033_s4] sm:$0xff]  ;;  %v390_v42 = vperm.slane %v950_v33, 2  ;;  %v416_v11 = vperm.slane %v950_v33, 3 }
  0x18   : > { %311 = vmatpush.msra.mxu0 %v285_v12  ;;  %331 = vmatpush.msra.mxu1 %v286_v13  ;;  %v348_v36 = vld [vmem:[%s945_s27] ss:$2 sm:$0xf]  ;;  %v355_v40 = vperm.slane %v956_v35, 0  ;;  %v381_v41 = vperm.slane %v956_v35, 1  ;;  %v407_v10 = vperm.slane %v956_v35, 2 }
  0x19   : > { %v737_v37 = vld [vmem:[%s945_s27 + $0x20] ss:$2 sm:$0xf]  ;;  %v365_v43 = vmul.f32 %v364_v34, %v348_v36  ;;  %v741_v48 = vld [vmem:[%s945_s27 + $0x21] ss:$2 sm:$0xf]  ;;  %v391_v59 = vmul.f32 %v740_v47, %v390_v42 }
  0x1a   : > { %312 = vmatpush.msra.mxu0 %v283_v14  ;;  %332 = vmatpush.msra.mxu1 %v284_v15  ;;  %v738_v38 = vld [vmem:[%s945_s27 + $0x40] ss:$2 sm:$0xf]  ;;  %v366_v44 = vmul.f32 %v737_v37, %v364_v34  ;;  %v356_v49 = vmul.f32 %v355_v40, %v348_v36  ;;  %v357_v50 = vmul.f32 %v737_v37, %v355_v40  ;;  %v742_v53 = vld [vmem:[%s945_s27 + $0x41] ss:$2 sm:$0xf] }
  0x1b   : > { %v739_v39 = vld [vmem:[%s945_s27 + $0x60] ss:$2 sm:$0xf]  ;;  %v367_v45 = vmul.f32 %v738_v38, %v364_v34  ;;  %v358_v51 = vmul.f32 %v738_v38, %v355_v40  ;;  %v743_v54 = vld [vmem:[%s945_s27 + $0x61] ss:$2 sm:$0xf]  ;;  %v382_v55 = vmul.f32 %v740_v47, %v381_v41  ;;  %v383_v56 = vmul.f32 %v741_v48, %v381_v41 }
  0x1c   : > { %313 = vmatpush.msra.mxu0 %v281_v16  ;;  %333 = vmatpush.msra.mxu1 %v282_v17  ;;  %v368_v46 = vmul.f32 %v739_v39, %v364_v34  ;;  %v359_v52 = vmul.f32 %v739_v39, %v355_v40  ;;  %v384_v57 = vmul.f32 %v742_v53, %v381_v41  ;;  %v744_v0 = vld [vmem:[%s945_s27 + $0x2] ss:$2 sm:$0xf]  ;;  %v433_v13 = vperm.slane %v956_v35, 3 }
  0x1d   : > { %v385_v58 = vmul.f32 %v743_v54, %v381_v41  ;;  %v392_v60 = vmul.f32 %v741_v48, %v390_v42  ;;  %v393_v61 = vmul.f32 %v742_v53, %v390_v42  ;;  %v394_v62 = vmul.f32 %v743_v54, %v390_v42  ;;  %v745_v5 = vld [vmem:[%s945_s27 + $0x22] ss:$2 sm:$0xf] }
  0x1e   : > { %314 = vmatpush.msra.mxu0 %v279_v18  ;;  %334 = vmatpush.msra.mxu1 %v280_v19  ;;  %v386_v63 = vadd.f32 %v382_v55, %v356_v49  ;;  %v387_v1 = vadd.f32 %v383_v56, %v357_v50  ;;  %v388_v2 = vadd.f32 %v384_v57, %v358_v51  ;;  %v746_v6 = vld [vmem:[%s945_s27 + $0x42] ss:$2 sm:$0xf]  ;;  %v442_v14 = vperm.slane %v950_v33, 4 }
  0x1f   : > { %v389_v3 = vadd.f32 %v385_v58, %v359_v52  ;;  %v395_v4 = vadd.f32 %v391_v59, %v365_v43  ;;  %v396_v7 = vadd.f32 %v392_v60, %v366_v44  ;;  %v397_v8 = vadd.f32 %v393_v61, %v367_v45  ;;  %v747_v9 = vld [vmem:[%s945_s27 + $0x62] ss:$2 sm:$0xf]  ;;  %v752_v50 = vld [vmem:[%s945_s27 + $0x11] ss:$2 sm:$0xf] }
  0x20   : > { %315 = vmatpush.msra.mxu0 %v277_v20  ;;  %335 = vmatpush.msra.mxu1 %v278_v21  ;;  %v398_v12 = vadd.f32 %v394_v62, %v368_v46  ;;  %v459_v15 = vperm.slane %v956_v35, 4  ;;  %v408_v16 = vmul.f32 %v744_v0, %v407_v10  ;;  %v409_v17 = vmul.f32 %v745_v5, %v407_v10  ;;  %v753_v51 = vld [vmem:[%s945_s27 + $0x31] ss:$2 sm:$0xf] }
  0x21   : > { %v410_v18 = vmul.f32 %v746_v6, %v407_v10  ;;  %v411_v19 = vmul.f32 %v747_v9, %v407_v10  ;;  %v417_v20 = vmul.f32 %v744_v0, %v416_v11  ;;  %v418_v21 = vmul.f32 %v745_v5, %v416_v11  ;;  %v754_v56 = vld [vmem:[%s945_s27 + $0x51] ss:$2 sm:$0xf] }
  0x22   : > { %316 = vmatpush.msra.mxu0 %v275_v22  ;;  %336 = vmatpush.msra.mxu1 %v276_v23  ;;  %v419_v22 = vmul.f32 %v746_v6, %v416_v11  ;;  %v420_v23 = vmul.f32 %v747_v9, %v416_v11  ;;  %v755_v57 = vld [vmem:[%s945_s27 + $0x71] ss:$2 sm:$0xf]  ;;  %v460_v58 = vmul.f32 %v752_v50, %v459_v15  ;;  %v468_v62 = vperm.slane %v950_v33, 5 }
  0x23   : > { %v422_v34 = vadd.f32 %v418_v21, %v396_v7  ;;  %v461_v59 = vmul.f32 %v753_v51, %v459_v15  ;;  %v462_v60 = vmul.f32 %v754_v56, %v459_v15  ;;  %v463_v61 = vmul.f32 %v755_v57, %v459_v15  ;;  %v756_v6 = vld [vmem:[%s945_s27 + $0x12] ss:$2 sm:$0xf] }
  0x24   : > { %317 = vmatpush.msra.mxu0 %v273_v24  ;;  %337 = vmatpush.msra.mxu1 %v274_v25  ;;  %v748_v24 = vld [vmem:[%s945_s27 + $0x10] ss:$2 sm:$0xf]  ;;  %v423_v36 = vadd.f32 %v419_v22, %v397_v8  ;;  %v424_v37 = vadd.f32 %v420_v23, %v398_v12  ;;  %v494_v0 = vperm.slane %v950_v33, 6  ;;  %v469_v8 = vmul.f32 %v752_v50, %v468_v62 }
  0x25   : > { %v749_v25 = vld [vmem:[%s945_s27 + $0x30] ss:$2 sm:$0xf]  ;;  %v434_v38 = vmul.f32 %v748_v24, %v433_v13  ;;  %v443_v42 = vmul.f32 %v748_v24, %v442_v14  ;;  %v470_v9 = vmul.f32 %v753_v51, %v468_v62  ;;  %v471_v10 = vmul.f32 %v754_v56, %v468_v62  ;;  %v764_v50 = vld [vmem:[%s945_s27 + $0x21] ss:$2 sm:$0xf] }
  0x26   : > { %318 = vmatpush.msra.mxu0 %v271_v26  ;;  %338 = vmatpush.msra.mxu1 %v272_v27  ;;  %v412_v26 = vadd.f32 %v408_v16, %v386_v63  ;;  %v413_v27 = vadd.f32 %v409_v17, %v387_v1  ;;  %v435_v39 = vmul.f32 %v749_v25, %v433_v13  ;;  %v485_v63 = vperm.slane %v956_v35, 5  ;;  %v757_v7 = vld [vmem:[%s945_s27 + $0x32] ss:$2 sm:$0xf] }
  0x27   : > { %v444_v43 = vmul.f32 %v749_v25, %v442_v14  ;;  %v511_v1 = vperm.slane %v956_v35, 6  ;;  %v472_v11 = vmul.f32 %v755_v57, %v468_v62  ;;  %v758_v12 = vld [vmem:[%s945_s27 + $0x52] ss:$2 sm:$0xf] }
  0x28   : > { %319 = vmatpush.msra.mxu0 %v269_v28  ;;  %339 = vmatpush.msra.mxu1 %v270_v29  ;;  %v414_v28 = vadd.f32 %v410_v18, %v388_v2  ;;  %v415_v29 = vadd.f32 %v411_v19, %v389_v3  ;;  %v438_v46 = vadd.f32 %v434_v38, %v412_v26  ;;  %v760_v26 = vld [vmem:[%s945_s27 + $0x20] ss:$2 sm:$0xf]  ;;  %v765_v51 = vld [vmem:[%s945_s27 + $0x41] ss:$2 sm:$0xf] }
  0x29   : > { %v439_v47 = vadd.f32 %v435_v39, %v413_v27  ;;  %v448_v53 = vadd.f32 %v444_v43, %v422_v34  ;;  %v487_v15 = vmul.f32 %v757_v7, %v485_v63  ;;  %v488_v16 = vmul.f32 %v758_v12, %v485_v63  ;;  %v761_v27 = vld [vmem:[%s945_s27 + $0x40] ss:$2 sm:$0xf]  ;;  %v766_v62 = vld [vmem:[%s945_s27 + $0x61] ss:$2 sm:$0xf] }
  0x2a   : > { %320 = vmatpush.msra.mxu0 %v267_v30  ;;  %340 = vmatpush.msra.mxu1 %v268_v31  ;;  %v750_v30 = vld [vmem:[%s945_s27 + $0x50] ss:$2 sm:$0xf]  ;;  %v464_v2 = vadd.f32 %v460_v58, %v438_v46  ;;  %v763_v34 = vld [vmem:[%s945_s27 + $0x80] ss:$2 sm:$0xf] }
  0x2b   : > { %321 = vmatmul.f32.vlgmr.msra.gmra.mxu0 %v266_v32  ;;  %341 = vmatmul.f32.vlgmr.msra.gmra.mxu1 %v266_v32  ;;  %v751_v31 = vld [vmem:[%s945_s27 + $0x70] ss:$2 sm:$0xf]  ;;  %v421_v32 = vadd.f32 %v417_v20, %v395_v4  ;;  %v436_v40 = vmul.f32 %v750_v30, %v433_v13  ;;  %v445_v44 = vmul.f32 %v750_v30, %v442_v14 }
  0x2c   : > { %v437_v41 = vmul.f32 %v751_v31, %v433_v13  ;;  %v446_v45 = vmul.f32 %v751_v31, %v442_v14  ;;  %v465_v3 = vadd.f32 %v461_v59, %v439_v47  ;;  %v759_v13 = vld [vmem:[%s945_s27 + $0x72] ss:$2 sm:$0xf]  ;;  %v486_v14 = vmul.f32 %v756_v6, %v485_v63 }
  0x2d   : > { %v440_v48 = vadd.f32 %v436_v40, %v414_v28  ;;  %v447_v52 = vadd.f32 %v443_v42, %v421_v32  ;;  %v449_v54 = vadd.f32 %v445_v44, %v423_v36  ;;  %v489_v17 = vmul.f32 %v759_v13, %v485_v63  ;;  %v762_v32 = vld [vmem:[%s945_s27 + $0x60] ss:$2 sm:$0xf]  ;;  %v347_v40 = vld [vmem:[%s1033_s4 + $0x10] sm:$0x3] }
  0x2e   : > { %v441_v49 = vadd.f32 %v437_v41, %v415_v29  ;;  %v450_v55 = vadd.f32 %v446_v45, %v424_v37  ;;  %v474_v19 = vadd.f32 %v470_v9, %v448_v53  ;;  %v490_v22 = vadd.f32 %v486_v14, %v464_v2  ;;  %v581_v53 = vld [vmem:[%s1034_s5] sm:$0x3] }
  0x2f   : > { %v466_v4 = vadd.f32 %v462_v60, %v440_v48  ;;  %v473_v18 = vadd.f32 %v469_v8, %v447_v52  ;;  %v475_v20 = vadd.f32 %v471_v10, %v449_v54  ;;  %v491_v23 = vadd.f32 %v487_v15, %v465_v3  ;;  %v767_v63 = vld [vmem:[%s945_s27 + $0x81] ss:$2 sm:$0xf]  ;;  %v768_v10 = vld [vmem:[%s945_s27 + $0x22] ss:$2 sm:$0xf] }
  0x30   : > { %v467_v5 = vadd.f32 %v463_v61, %v441_v49  ;;  %v476_v21 = vadd.f32 %v472_v11, %v450_v55  ;;  %v495_v28 = vmul.f32 %v756_v6, %v494_v0  ;;  %v496_v29 = vmul.f32 %v757_v7, %v494_v0  ;;  %v769_v11 = vld [vmem:[%s945_s27 + $0x42] ss:$2 sm:$0xf] }
  0x31   : > { %v492_v24 = vadd.f32 %v488_v16, %v466_v4  ;;  %v497_v30 = vmul.f32 %v758_v12, %v494_v0  ;;  %v498_v31 = vmul.f32 %v759_v13, %v494_v0  ;;  %v512_v36 = vmul.f32 %v760_v26, %v511_v1  ;;  %v770_v16 = vld [vmem:[%s945_s27 + $0x62] ss:$2 sm:$0xf] }
  0x32   : > { %v493_v25 = vadd.f32 %v489_v17, %v467_v5  ;;  %v513_v37 = vmul.f32 %v761_v27, %v511_v1  ;;  %v514_v38 = vmul.f32 %v762_v32, %v511_v1  ;;  %v515_v39 = vmul.f32 %v763_v34, %v511_v1  ;;  %v771_v17 = vld [vmem:[%s945_s27 + $0x82] ss:$2 sm:$0xf] }
  0x33   : > { %v499_v41 = vadd.f32 %v495_v28, %v473_v18  ;;  %v500_v42 = vadd.f32 %v496_v29, %v474_v19  ;;  %v501_v43 = vadd.f32 %v497_v30, %v475_v20  ;;  %v502_v44 = vadd.f32 %v498_v31, %v476_v21 }
  0x34   : > { %v516_v45 = vadd.f32 %v512_v36, %v490_v22  ;;  %v517_v46 = vadd.f32 %v513_v37, %v491_v23  ;;  %v518_v47 = vadd.f32 %v514_v38, %v492_v24  ;;  %v519_v48 = vadd.f32 %v515_v39, %v493_v25 }
  0x35   : > { %v520_v49 = vperm.slane %v950_v33, 7  ;;  %v537_v52 = vperm.slane %v956_v35, 7  ;;  %v546_v54 = vperm.slane %v347_v40, 0  ;;  %v563_v55 = vperm.slane %v950_v33, 0 }
  0x36   : > { %v572_v56 = vperm.slane %v347_v40, 1  ;;  %v583_v57 = vperm.slane %v581_v53, 0  ;;  %v584_v29 = vperm.slane %v581_v53, 1 }
  0x37   : > { %v521_v58 = vmul.f32 %v760_v26, %v520_v49  ;;  %v522_v59 = vmul.f32 %v761_v27, %v520_v49  ;;  %v523_v60 = vmul.f32 %v762_v32, %v520_v49  ;;  %v524_v61 = vmul.f32 %v763_v34, %v520_v49 }
  0x38   : > { %v538_v0 = vmul.f32 %v764_v50, %v537_v52  ;;  %v539_v1 = vmul.f32 %v765_v51, %v537_v52  ;;  %v540_v35 = vmul.f32 %v766_v62, %v537_v52  ;;  %v541_v2 = vmul.f32 %v767_v63, %v537_v52 }
  0x39   : > { %v525_v3 = vadd.f32 %v521_v58, %v499_v41  ;;  %v526_v4 = vadd.f32 %v522_v59, %v500_v42  ;;  %v527_v5 = vadd.f32 %v523_v60, %v501_v43  ;;  %v528_v33 = vadd.f32 %v524_v61, %v502_v44  ;;  %v299_v58 = vld [vmem:[%s1031_s2] sm:$0x3] }
  0x3a   : > { %v542_v6 = vadd.f32 %v538_v0, %v516_v45  ;;  %v543_v7 = vadd.f32 %v539_v1, %v517_v46  ;;  %v544_v8 = vadd.f32 %v540_v35, %v518_v47  ;;  %v545_v9 = vadd.f32 %v541_v2, %v519_v48 }
  0x3b   : > { %v547_v12 = vmul.f32 %v764_v50, %v546_v54  ;;  %v548_v13 = vmul.f32 %v765_v51, %v546_v54  ;;  %v549_v14 = vmul.f32 %v766_v62, %v546_v54  ;;  %v550_v15 = vmul.f32 %v767_v63, %v546_v54 }
  0x3c   : > { %v564_v18 = vmul.f32 %v768_v10, %v563_v55  ;;  %v565_v19 = vmul.f32 %v769_v11, %v563_v55  ;;  %v566_v20 = vmul.f32 %v770_v16, %v563_v55  ;;  %v567_v21 = vmul.f32 %v771_v17, %v563_v55 }
  0x3d   : > { %v551_v22 = vadd.f32 %v547_v12, %v525_v3  ;;  %v552_v23 = vadd.f32 %v548_v13, %v526_v4  ;;  %v553_v24 = vadd.f32 %v549_v14, %v527_v5  ;;  %v554_v25 = vadd.f32 %v550_v15, %v528_v33 }
  0x3e   : > { %v568_v26 = vadd.f32 %v564_v18, %v542_v6  ;;  %v569_v27 = vadd.f32 %v565_v19, %v543_v7  ;;  %v570_v28 = vadd.f32 %v566_v20, %v544_v8  ;;  %v573_v30 = vmul.f32 %v768_v10, %v572_v56 }
  0x3f   : > { %v574_v31 = vmul.f32 %v769_v11, %v572_v56  ;;  %v575_v32 = vmul.f32 %v770_v16, %v572_v56  ;;  %v576_v34 = vmul.f32 %v771_v17, %v572_v56  ;;  %v571_v36 = vadd.f32 %v567_v21, %v545_v9 }
  0x40   : > { %v577_v37 = vadd.f32 %v573_v30, %v551_v22  ;;  %v587_v41 = vadd.f32 %v583_v57, %v568_v26  ;;  %v589_v42 = vadd.f32 %v583_v57, %v569_v27  ;;  %v591_v43 = vadd.f32 %v583_v57, %v570_v28 }
  0x41   : > { %v578_v38 = vadd.f32 %v574_v31, %v552_v23  ;;  %v579_v39 = vadd.f32 %v575_v32, %v553_v24  ;;  %v580_v40 = vadd.f32 %v576_v34, %v554_v25  ;;  %v593_v48 = vadd.f32 %v583_v57, %v571_v36 }
  0x42   : > { %v588_v44 = vadd.f32 %v584_v29, %v577_v37  ;;  %v301_v0 = vperm.slane %v299_v58, 0  ;;  %v302_v35 = vperm.slane %v299_v58, 1 }
  0x43   : > { %v590_v45 = vadd.f32 %v584_v29, %v578_v38  ;;  %v592_v46 = vadd.f32 %v584_v29, %v579_v39  ;;  %v594_v47 = vadd.f32 %v584_v29, %v580_v40 }
  0x44   : > { %v603_v49 = vrot.slane %v588_v44, 4 }
  0x45   : > { %v604_v50 = vrot.slane %v590_v45, 4  ;;  %v605_v51 = vrot.slane %v592_v46, 4  ;;  %v606_v52 = vrot.slane %v594_v47, 4 }
  0x46   : > { %v608_v53 = vsel %vm607_vm0, %v587_v41, %v603_v49 }
  0x47   : > { %v609_v54 = vsel %vm607_vm0, %v589_v42, %v604_v50  ;;  %v610_v55 = vsel %vm607_vm0, %v591_v43, %v605_v51  ;;  %v611_v56 = vsel %vm607_vm0, %v593_v48, %v606_v52  ;;  %612 = vst [vmem:[#allocation1] ss:$2 sm:$0xff] %v608_v53 }
  0x48   : > { %614 = vst [vmem:[#allocation1 + $0x1] ss:$2 sm:$0xff] %v609_v54 }
  0x49   : > { %616 = vst [vmem:[#allocation1 + $0x10] ss:$2 sm:$0xff] %v610_v55 }
  0x4a   : > { %618 = vst [vmem:[#allocation1 + $0x11] ss:$2 sm:$0xff] %v611_v56 }
  0x4f   : > { %v619_v59 = vld.sshfl [vmem:[#allocation1] sm:$0xff pattern:$0x75316420]  ;;  %v620_v57 = vld.sshfl [vmem:[#allocation1 + $0x8] sm:$0xff pattern:$0x75316420] }
  0x50   : > { %v624_v60 = vrot.slane %v619_v59, 7  ;;  %v625_v61 = vrot.slane %v620_v57, 7 }
  0x51   : > { %v621_v62 = vld.sshfl [vmem:[#allocation1 + $0x10] sm:$0xff pattern:$0x75316420]  ;;  %v622_v63 = vld.sshfl [vmem:[#allocation1 + $0x18] sm:$0xff pattern:$0x75316420] }
  0x52   : > { %v626_v1 = vrot.slane %v621_v62, 7  ;;  %v628_v2 = vrot.slane %v622_v63, 7 }
  0x54   : > { %v627_v3 = vsel %vm623_vm1, %v624_v60, %v626_v1  ;;  %642 = vst [vmem:[%s265_s17 + $0x20] sm:$0x1] %v626_v1  ;;  %v629_v4 = vsel %vm623_vm1, %v625_v61, %v628_v2 }
  0x55   : > { %640 = vst [vmem:[%s265_s17 + $0x10] sm:$0xff] %v627_v3 }
  0x56   : > { %641 = vst [vmem:[%s265_s17 + $0x18] sm:$0xff] %v629_v4 }
  0x57   : > { %643 = vst [vmem:[%s265_s17 + $0x28] sm:$0x1] %v628_v2 }
  0xa8   : > { %v322_v5 = vpop.f32.mrf.mxu0  ;;  %v342_v33 = vpop.f32.mrf.mxu1 }
  0xa9   : > { %v323_v6 = vadd.f32 %v322_v5, %v301_v0  ;;  %v343_v7 = vadd.f32 %v342_v33, %v302_v35 }
  0xab   : > { %v636_v8 = vsel %vm623_vm1, %v323_v6, %v624_v60  ;;  %v637_v9 = vsel %vm623_vm1, %v343_v7, %v625_v61 }
  0xac   : > { %638 = vst [vmem:[%s265_s17] sm:$0xff] %v636_v8 }
  0xad   : > { %639 = vst [vmem:[%s265_s17 + $0x8] sm:$0xff] %v637_v9 }
  0xae PF: > { %s16_s21 = sadd.s32 1, %s790_s21  }
  0xaf   : > { %p13_p4 = scmp.ge.s32.totalorder %s16_s21, 4  }
  0xb1   :  { %15 = sbr.rel (!%p13_p4) target bundleno = 1 (0x1), region = 115 }

</bundles_post_ra>
